<compile_context>
chip_gen: v6e
topology: v6e:2x2x1
jax: 0.10.0
libtpu: 0.0.40
codegen_flags: <defaults>
</compile_context>

<pallas_src>
import jax
import jax.numpy as jnp
from jax.experimental import pallas as pl
from jax.experimental.pallas import tpu as pltpu

_MB = 1024 * 1024
_TINY_BYTES = 32 * 1024   # below this, XLA fusion beats pallas_call launch cost
_MIN_TM = 512             # rows; measured HBM utilization plateaus at >=512-row tiles
_MAX_TM = 8192            # per-step cap (keeps ragged-tail waste bounded)


def _pretext_kernel(x_ref, shuf_ref, mask_ref, cx_ref, cm_ref):
    x = x_ref[...]
    shuf = shuf_ref[...]
    # mask may arrive as bool/int8/float; cast in-register (free on the VPU,
    # saves HBM read bytes vs. a pre-upcast float mask).
    mask = mask_ref[...].astype(x.dtype)
    one = jnp.asarray(1, dtype=x.dtype)  # dtype-typed: safe for integer x too
    # corrupt_x = x * (1 - mask) + shuffled * mask
    corrupt_x = x * (one - mask) + shuf * mask
    cx_ref[...] = corrupt_x
    # corrupt_mask = 1.0 * (x != corrupt_x); output dtype is a perf knob
    # (int8 cuts this write stream 4x for f32 inputs).
    cm_ref[...] = (x != corrupt_x).astype(cm_ref.dtype)


def _column_shuffle(x, key):
    """Shuffle each column of x with an independent random permutation.

    Equivalent to PretextGenerator.shuffle (torch.randperm per column).
    """
    m, n = x.shape
    idx = jnp.argsort(jax.random.uniform(key, (m, n)), axis=0)
    # TODO(synk): the per-column random row gather is data-dependent and has
    # no clean BlockSpec expression; it stays in plain JAX (XLA sort+gather).
    # Folding it into the kernel (column-tiled, take_along_axis on a VMEM
    # tile) would save the `shuffled` HBM round trip, but only if Mosaic
    # lowers the per-lane dynamic sublane gather on the target generation.
    return jnp.take_along_axis(x, idx, axis=0)


def _round_up(v, mult):
    return ((v + mult - 1) // mult) * mult


def _chip_params():
    """Best-effort (VMEM capacity bytes, TensorCores per device)."""
    vmem = 64 * _MB   # conservative fallback (v7x-sized) if the query fails
    cores = 1
    try:
        info = pltpu.get_tpu_info()
        vmem = int(getattr(info, "vmem_capacity_bytes", vmem))
    except Exception:
        pass
    try:
        kind = jax.devices()[0].device_kind.lower()
        if "v7" in kind:  # v7x exposes 2 TensorCores behind one device
            cores = 2
    except Exception:
        pass
    return vmem, cores


def pretext_generator(x, mask, key, *, corrupt_mask_dtype=None):
    """Returns (corrupt_x, corrupt_mask), matching PretextGenerator.forward.

    corrupt_mask_dtype: dtype of the second output.  Defaults to x.dtype
    (exactly matching the PyTorch module, which returns 1.0 * (x != cx));
    pass jnp.int8 to cut the HBM bytes of this purely memory-bound op.
    """
    m, n = x.shape
    cm_dtype = x.dtype if corrupt_mask_dtype is None else jnp.dtype(corrupt_mask_dtype)
    shuffled = _column_shuffle(x, key)

    x_item = jnp.dtype(x.dtype).itemsize
    mask_item = jnp.dtype(mask.dtype).itemsize
    cm_item = jnp.dtype(cm_dtype).itemsize

    # --- tiny-input fast path: skip Pallas, let XLA fuse ---------------------
    if m * n * x_item <= _TINY_BYTES:
        one = jnp.asarray(1, dtype=x.dtype)
        maskf = mask.astype(x.dtype)
        corrupt_x = x * (one - maskf) + shuffled * maskf
        return corrupt_x, (x != corrupt_x).astype(cm_dtype)

    # --- VMEM budget (per-generation) ----------------------------------------
    vmem_bytes, num_cores = _chip_params()
    # 5 streams x double-buffer must fit: ~1/3 of physical VMEM
    # => ~42 MiB on v5e/v6e (128 MiB VMEM), ~21 MiB on v7x (64 MiB VMEM).
    budget = min(48 * _MB, vmem_bytes // 3)
    per_row_bytes = 2 * n * (3 * x_item + mask_item + cm_item)

    # --- row-tile selection ---------------------------------------------------
    # Biggest tile the budget allows; never below _MIN_TM when m allows;
    # rounded to 32 sublanes (packed int8/bool tile); never bigger than m.
    tm = max(_MIN_TM, budget // per_row_bytes)
    tm = min(tm, _MAX_TM, _round_up(m, 32))
    tm = max(32, (tm // 32) * 32)

    # Only split further on multi-TensorCore chips (v7x): target >= 2 pipeline
    # steps per core, but never drop below _MIN_TM rows.
    if num_cores >= 2 and m > num_cores * _MIN_TM:
        tm_split = _round_up(pl.cdiv(m, 2 * num_cores), 32)
        tm = min(tm, max(_MIN_TM, tm_split))

    grid = (pl.cdiv(m, tm),)  # Pallas masks the ragged last row block.

    # Full (unpadded) feature extent: trailing block dim == full array dim is
    # legal for any n and avoids pad/slice HBM round trips.
    row_spec = pl.BlockSpec((tm, n), lambda i: (i, 0))
    # TODO(synk): on v7x with very few steps per core, pipeline_mode=
    # pl.Buffered(3) on the input specs would hide the DMA prologue (~few %).

    flops = 4 * m * n
    bytes_accessed = m * n * (3 * x_item + mask_item + cm_item)
    vmem_limit = int(min(vmem_bytes * 9 // 10,
                         max(32 * _MB, tm * per_row_bytes + 8 * _MB)))

    corrupt_x, corrupt_mask = pl.pallas_call(
        _pretext_kernel,
        out_shape=(
            jax.ShapeDtypeStruct((m, n), x.dtype),
            jax.ShapeDtypeStruct((m, n), cm_dtype),
        ),
        grid_spec=pltpu.PrefetchScalarGridSpec(
            num_scalar_prefetch=0,
            grid=grid,
            in_specs=[row_spec, row_spec, row_spec],
            out_specs=[row_spec, row_spec],
        ),
        compiler_params=pltpu.CompilerParams(
            dimension_semantics=("parallel",),
            vmem_limit_bytes=vmem_limit,
        ),
        cost_estimate=pl.CostEstimate(
            flops=flops, transcendentals=0, bytes_accessed=bytes_accessed
        ),
    )(x, shuffled, mask)
    return corrupt_x, corrupt_mask


if __name__ == "__main__":
    key = jax.random.PRNGKey(0)
    k_x, k_mask, k_perm, k_x2, k_mask2, k_perm2 = jax.random.split(key, 6)

    def reference(x, mask, key):
        shuffled = _column_shuffle(x, key)
        maskf = mask.astype(x.dtype)
        cx = x * (1.0 - maskf) + shuffled * maskf
        cm = (x != cx).astype(jnp.float32)
        return cx, cm

    # Case 1: moderate tabular batch -> Pallas kernel.  n=96 is NOT a multiple
    # of 128: exercised via the full-feature-extent BlockSpec (no pad/slice),
    # mask stays bool end-to-end.
    m, n = 384, 96
    x = jax.random.normal(k_x, (m, n), dtype=jnp.float32)
    mask = jax.random.uniform(k_mask, (m, n)) < 0.3          # bool mask
    cx_ref, cm_ref = reference(x, mask, k_perm)

    corrupt_x, corrupt_mask = pretext_generator(x, mask, k_perm)
    jax.block_until_ready((corrupt_x, corrupt_mask))
    assert corrupt_x.dtype == x.dtype and corrupt_mask.dtype == x.dtype
    assert jnp.allclose(corrupt_x, cx_ref)
    assert jnp.allclose(corrupt_mask, cm_ref)

    # Case 1b: same inputs, int8 corrupt_mask output stream (perf knob).
    cx_i8, cm_i8 = pretext_generator(x, mask, k_perm, corrupt_mask_dtype=jnp.int8)
    jax.block_until_ready((cx_i8, cm_i8))
    assert cm_i8.dtype == jnp.int8
    assert jnp.allclose(cx_i8, cx_ref)
    assert jnp.allclose(cm_i8.astype(jnp.float32), cm_ref)

    # Case 2: tiny ragged batch -> fused-XLA fast path.
    m2, n2 = 13, 7
    x2 = jax.random.normal(k_x2, (m2, n2), dtype=jnp.float32)
    mask2 = jax.random.uniform(k_mask2, (m2, n2)) < 0.3
    cx2, cm2 = pretext_generator(x2, mask2, k_perm2)
    jax.block_until_ready((cx2, cm2))
    cx2_ref, cm2_ref = reference(x2, mask2, k_perm2)
    assert jnp.allclose(cx2, cx2_ref)
    assert jnp.allclose(cm2, cm2_ref)

    print("KERNEL_OK")
</pallas_src>

<mosaic_0001>
module attributes {stable_mosaic.version = 11 : i64} {
  func.func @_pretext_kernel(%arg0: i32, %arg1: memref<384x96xf32, #tpu.memory_space<vmem>>, %arg2: memref<384x96xf32, #tpu.memory_space<vmem>>, %arg3: memref<384x96xi32, #tpu.memory_space<vmem>>, %arg4: memref<384x96xf32, #tpu.memory_space<vmem>>, %arg5: memref<384x96xf32, #tpu.memory_space<vmem>>) attributes {dimension_semantics = [#tpu.dimension_semantics<parallel>], iteration_bounds = array<i64: 1>, scalar_prefetch = 0 : i64, scratch_operands = 0 : i64, tpu.core_type = #tpu.core_type<tc>, window_params = [{transform_indices = @transform_0, window_bounds = array<i64: 384, 96>}, {transform_indices = @transform_1, window_bounds = array<i64: 384, 96>}, {transform_indices = @transform_2, window_bounds = array<i64: 384, 96>}, {transform_indices = @transform_3, window_bounds = array<i64: 384, 96>}, {transform_indices = @transform_4, window_bounds = array<i64: 384, 96>}]} {
    %c0 = arith.constant 0 : index
    %c0_0 = arith.constant 0 : index
    %0 = vector.load %arg1[%c0, %c0_0] : memref<384x96xf32, #tpu.memory_space<vmem>>, vector<384x96xf32>
    %c0_1 = arith.constant 0 : index
    %c0_2 = arith.constant 0 : index
    %1 = vector.load %arg2[%c0_1, %c0_2] : memref<384x96xf32, #tpu.memory_space<vmem>>, vector<384x96xf32>
    %c0_3 = arith.constant 0 : index
    %c0_4 = arith.constant 0 : index
    %2 = vector.load %arg3[%c0_3, %c0_4] : memref<384x96xi32, #tpu.memory_space<vmem>>, vector<384x96xi32>
    %cst = arith.constant dense<0> : vector<384x96xi32>
    %3 = arith.cmpi ne, %2, %cst : vector<384x96xi32>
    %4 = arith.extui %3 : vector<384x96xi1> to vector<384x96xi32>
    %5 = arith.sitofp %4 : vector<384x96xi32> to vector<384x96xf32>
    %cst_5 = arith.constant 1.000000e+00 : f32
    %6 = vector.broadcast %cst_5 : f32 to vector<384x96xf32>
    %7 = arith.subf %6, %5 : vector<384x96xf32>
    %8 = arith.mulf %0, %7 : vector<384x96xf32>
    %9 = arith.mulf %1, %5 : vector<384x96xf32>
    %10 = arith.addf %8, %9 : vector<384x96xf32>
    %c0_6 = arith.constant 0 : index
    %c0_7 = arith.constant 0 : index
    %11 = vector.load %arg4[%c0_6, %c0_7] : memref<384x96xf32, #tpu.memory_space<vmem>>, vector<384x96xf32>
    tpu.vector_store %arg4[%c0_6, %c0_7], %10 {strides = array<i32>} : memref<384x96xf32, #tpu.memory_space<vmem>>, vector<384x96xf32>,
    %12 = arith.cmpf one, %0, %10 : vector<384x96xf32>
    %13 = arith.extui %12 : vector<384x96xi1> to vector<384x96xi32>
    %14 = arith.sitofp %13 : vector<384x96xi32> to vector<384x96xf32>
    %c0_8 = arith.constant 0 : index
    %c0_9 = arith.constant 0 : index
    %15 = vector.load %arg5[%c0_8, %c0_9] : memref<384x96xf32, #tpu.memory_space<vmem>>, vector<384x96xf32>
    tpu.vector_store %arg5[%c0_8, %c0_9], %14 {strides = array<i32>} : memref<384x96xf32, #tpu.memory_space<vmem>>, vector<384x96xf32>,
    return
  }
  func.func @transform_0(%arg0: i32) -> (i32, i32) {
    %c0_i32 = arith.constant 0 : i32
    %c0_i32_0 = arith.constant 0 : i32
    return %arg0, %c0_i32 : i32, i32
  }
  func.func @transform_1(%arg0: i32) -> (i32, i32) {
    %c0_i32 = arith.constant 0 : i32
    %c0_i32_0 = arith.constant 0 : i32
    return %arg0, %c0_i32 : i32, i32
  }
  func.func @transform_2(%arg0: i32) -> (i32, i32) {
    %c0_i32 = arith.constant 0 : i32
    %c0_i32_0 = arith.constant 0 : i32
    return %arg0, %c0_i32 : i32, i32
  }
  func.func @transform_3(%arg0: i32) -> (i32, i32) {
    %c0_i32 = arith.constant 0 : i32
    %c0_i32_0 = arith.constant 0 : i32
    return %arg0, %c0_i32 : i32, i32
  }
  func.func @transform_4(%arg0: i32) -> (i32, i32) {
    %c0_i32 = arith.constant 0 : i32
    %c0_i32_0 = arith.constant 0 : i32
    return %arg0, %c0_i32 : i32, i32
  }
}

</mosaic_0001>

<bundles_post_ra>
// kernel: tpu_custom_call.1
= control target key start
LH: loop header
LB: loop body
LE: loop exit
PB: predicated region body
PF: predicated region fallthrough
CT: control target
= control target key end

     0   :  { %v2169_v5 = vmov 0.0   ;;  %vm496_vm1 = vcmask 785408   ;;  %s2164_s0 = inlined_call_operand.vmem [shape: f32[384,96], index: 0, kind: input, shape index: {}]   ;;  %s2165_s1 = inlined_call_operand.vmem [shape: f32[384,96], index: 1, kind: input, shape index: {}]   ;;  %s2166_s2 = inlined_call_operand.vmem [shape: s32[384,96], index: 2, kind: input, shape index: {}]   ;;  %s2167_s3 = inlined_call_operand.vmem [shape: f32[384,96], index: 3, kind: output, shape index: {0}]   ;;  %s2168_s4 = inlined_call_operand.vmem [shape: f32[384,96], index: 4, kind: output, shape index: {1}]  }
   0x1   :  { %v64_v0 = vld [vmem:[%s2165_s1] sm:$0xff]  ;;  %v65_v2 = vld [vmem:[%s2165_s1 + $0x8] sm:$0xff]  ;;  %v66_v7 = vld [vmem:[%s2165_s1 + $0x10] sm:$0xff] }
   0x2   :  { %v112_v1 = vld [vmem:[%s2166_s2] sm:$0xff]  ;;  %v113_v3 = vld [vmem:[%s2166_s2 + $0x8] sm:$0xff]  ;;  %v114_v8 = vld [vmem:[%s2166_s2 + $0x10] sm:$0xff] }
   0x3   :  { %vm160_vm0 = vcmp.ne.s32.totalorder %v112_v1, 0  ;;  %v883_v4 = vld [vmem:[%s2164_s0] sm:$0xff]  ;;  %vm161_vm2 = vcmp.ne.s32.totalorder %v113_v3, 0  ;;  %v895_v11 = vld [vmem:[%s2164_s0 + $0x8] sm:$0xff]  ;;  %vm162_vm3 = vcmp.ne.s32.totalorder %v114_v8, 0  ;;  %v67_v13 = vld [vmem:[%s2165_s1 + $0x18] sm:$0xff] }
   0x4   :  { %v745_v6 = vsel %vm160_vm0, 1.0, %v2169_v5  ;;  %v746_v12 = vsel %vm161_vm2, 1.0, %v2169_v5  ;;  %v115_v14 = vld [vmem:[%s2166_s2 + $0x18] sm:$0xff]  ;;  %v907_v17 = vld [vmem:[%s2164_s0 + $0x10] sm:$0xff]  ;;  %v747_v18 = vsel %vm162_vm3, 1.0, %v2169_v5  ;;  %v116_v19 = vld [vmem:[%s2166_s2 + $0x20] sm:$0xff] }
   0x5   :  { %v304_v9 = vsub.f32 1.0, %v745_v6  ;;  %v400_v10 = vmul.f32 %v745_v6, %v64_v0  ;;  %v305_v15 = vsub.f32 1.0, %v746_v12  ;;  %v401_v16 = vmul.f32 %v746_v12, %v65_v2  ;;  %v917_v23 = vld [vmem:[%s2164_s0 + $0x18] sm:$0xff]  ;;  %v68_v25 = vld [vmem:[%s2165_s1 + $0x20] sm:$0xff]  ;;  %v117_v26 = vld [vmem:[%s2166_s2 + $0x28] sm:$0xff] }
   0x6   :  { %vm163_vm4 = vcmp.ne.s32.totalorder %v115_v14, 0  ;;  %v306_v21 = vsub.f32 1.0, %v747_v18  ;;  %v402_v22 = vmul.f32 %v747_v18, %v66_v7  ;;  %vm164_vm5 = vcmp.ne.s32.totalorder %v116_v19, 0  ;;  %v118_v30 = vld [vmem:[%s2166_s2 + $0x30] sm:$0xff]  ;;  %v936_v33 = vld [vmem:[%s2164_s0 + $0x20] sm:$0xff]  ;;  %v69_v35 = vld [vmem:[%s2165_s1 + $0x28] sm:$0xff] }
   0x7   :  { %v352_v20 = vmul.f32 %v304_v9, %v883_v4  ;;  %v748_v24 = vsel %vm163_vm4, 1.0, %v2169_v5  ;;  %v353_v27 = vmul.f32 %v305_v15, %v895_v11  ;;  %v749_v34 = vsel %vm164_vm5, 1.0, %v2169_v5  ;;  %v119_v36 = vld [vmem:[%s2166_s2 + $0x38] sm:$0xff]  ;;  %v120_v41 = vld [vmem:[%s2166_s2 + $0x40] sm:$0xff]  ;;  %v961_v43 = vld [vmem:[%s2164_s0 + $0x28] sm:$0xff] }
   0x8   :  { %v307_v28 = vsub.f32 1.0, %v748_v24  ;;  %v403_v29 = vmul.f32 %v748_v24, %v67_v13  ;;  %v354_v32 = vmul.f32 %v306_v21, %v907_v17  ;;  %vm165_vm6 = vcmp.ne.s32.totalorder %v117_v26, 0  ;;  %v70_v45 = vld [vmem:[%s2165_s1 + $0x30] sm:$0xff]  ;;  %v121_v46 = vld [vmem:[%s2166_s2 + $0x48] sm:$0xff]  ;;  %v71_v51 = vld [vmem:[%s2165_s1 + $0x38] sm:$0xff] }
   0x9   :  { %v930_v31 = vadd.f32 %v400_v10, %v352_v20  ;;  %v945_v37 = vadd.f32 %v401_v16, %v353_v27  ;;  %v308_v39 = vsub.f32 1.0, %v749_v34  ;;  %v404_v40 = vmul.f32 %v749_v34, %v68_v25  ;;  %v989_v52 = vld [vmem:[%s2164_s0 + $0x30] sm:$0xff]  ;;  %v72_v55 = vld [vmem:[%s2165_s1 + $0x40] sm:$0xff]  ;;  %v1007_v60 = vld [vmem:[%s2164_s0 + $0x38] sm:$0xff] }
   0xa   :  { %v355_v38 = vmul.f32 %v307_v28, %v917_v23  ;;  %v956_v42 = vadd.f32 %v402_v22, %v354_v32  ;;  %v750_v44 = vsel %vm165_vm6, 1.0, %v2169_v5  ;;  %vm166_vm7 = vcmp.ne.s32.totalorder %v118_v30, 0  ;;  %v73_v61 = vld [vmem:[%s2165_s1 + $0x48] sm:$0xff]  ;;  %v122_v62 = vld [vmem:[%s2166_s2 + $0x50] sm:$0xff]  ;;  %v1018_v1 = vld [vmem:[%s2164_s0 + $0x40] sm:$0xff] }
   0xb   :  { %497 = vst.msk [vmem:[%s2167_s3] sm:$0xff] %vm496_vm1, %v930_v31  ;;  %vm167_vm8 = vcmp.ne.s32.totalorder %v119_v36, 0  ;;  %498 = vst.msk [vmem:[%s2167_s3 + $0x8] sm:$0xff] %vm496_vm1, %v945_v37  ;;  %v356_v48 = vmul.f32 %v308_v39, %v936_v33  ;;  %v309_v49 = vsub.f32 1.0, %v750_v44  ;;  %v405_v50 = vmul.f32 %v750_v44, %v69_v35  ;;  %v123_v6 = vld [vmem:[%s2166_s2 + $0x58] sm:$0xff]  ;;  %v1036_v12 = vld [vmem:[%s2164_s0 + $0x48] sm:$0xff] }
   0xc   :  { %v975_v47 = vadd.f32 %v403_v29, %v355_v38  ;;  %499 = vst.msk [vmem:[%s2167_s3 + $0x10] sm:$0xff] %vm496_vm1, %v956_v42  ;;  %v751_v53 = vsel %vm166_vm7, 1.0, %v2169_v5  ;;  %v752_v54 = vsel %vm167_vm8, 1.0, %v2169_v5  ;;  %vm168_vm9 = vcmp.ne.s32.totalorder %v120_v41, 0  ;;  %v74_v13 = vld [vmem:[%s2165_s1 + $0x50] sm:$0xff]  ;;  %v124_v18 = vld [vmem:[%s2166_s2 + $0x60] sm:$0xff] }
   0xd   :  { %vm169_vm10 = vcmp.ne.s32.totalorder %v121_v46, 0  ;;  %v1001_v56 = vadd.f32 %v404_v40, %v356_v48  ;;  %v357_v57 = vmul.f32 %v309_v49, %v961_v43  ;;  %v310_v58 = vsub.f32 1.0, %v751_v53  ;;  %v125_v19 = vld [vmem:[%s2166_s2 + $0x68] sm:$0xff]  ;;  %v1059_v22 = vld [vmem:[%s2164_s0 + $0x50] sm:$0xff]  ;;  %v75_v25 = vld [vmem:[%s2165_s1 + $0x58] sm:$0xff] }
   0xe   :  { %500 = vst.msk [vmem:[%s2167_s3 + $0x18] sm:$0xff] %vm496_vm1, %v975_v47  ;;  %v406_v59 = vmul.f32 %v751_v53, %v70_v45  ;;  %v311_v63 = vsub.f32 1.0, %v752_v54  ;;  %v407_v0 = vmul.f32 %v752_v54, %v71_v51  ;;  %v753_v2 = vsel %vm168_vm9, 1.0, %v2169_v5  ;;  %v126_v30 = vld [vmem:[%s2166_s2 + $0x70] sm:$0xff]  ;;  %v127_v32 = vld [vmem:[%s2166_s2 + $0x78] sm:$0xff]  ;;  %v76_v38 = vld [vmem:[%s2165_s1 + $0x60] sm:$0xff] }
   0xf   :  { %v754_v3 = vsel %vm169_vm10, 1.0, %v2169_v5  ;;  %501 = vst.msk [vmem:[%s2167_s3 + $0x20] sm:$0xff] %vm496_vm1, %v1001_v56  ;;  %v1030_v7 = vadd.f32 %v405_v50, %v357_v57  ;;  %v358_v8 = vmul.f32 %v310_v58, %v989_v52  ;;  %v312_v9 = vsub.f32 1.0, %v753_v2  ;;  %v1084_v35 = vld [vmem:[%s2164_s0 + $0x58] sm:$0xff]  ;;  %v77_v45 = vld [vmem:[%s2165_s1 + $0x68] sm:$0xff]  ;;  %v1109_v46 = vld [vmem:[%s2164_s0 + $0x60] sm:$0xff] }
  0x10   :  { %v408_v10 = vmul.f32 %v753_v2, %v72_v55  ;;  %v359_v14 = vmul.f32 %v311_v63, %v1007_v60  ;;  %v313_v15 = vsub.f32 1.0, %v754_v3  ;;  %v409_v16 = vmul.f32 %v754_v3, %v73_v61  ;;  %v78_v50 = vld [vmem:[%s2165_s1 + $0x70] sm:$0xff]  ;;  %v1127_v57 = vld [vmem:[%s2164_s0 + $0x68] sm:$0xff]  ;;  %v79_v58 = vld [vmem:[%s2165_s1 + $0x78] sm:$0xff] }
  0x11   :  { %vm170_vm11 = vcmp.ne.s32.totalorder %v122_v62, 0  ;;  %502 = vst.msk [vmem:[%s2167_s3 + $0x28] sm:$0xff] %vm496_vm1, %v1030_v7  ;;  %v1053_v20 = vadd.f32 %v406_v59, %v358_v8  ;;  %v360_v21 = vmul.f32 %v312_v9, %v1018_v1  ;;  %vm171_vm12 = vcmp.ne.s32.totalorder %v123_v6, 0  ;;  %v128_v59 = vld [vmem:[%s2166_s2 + $0x80] sm:$0xff]  ;;  %v1138_v63 = vld [vmem:[%s2164_s0 + $0x70] sm:$0xff]  ;;  %v129_v3 = vld [vmem:[%s2166_s2 + $0x88] sm:$0xff] }
  0x12   :  { %v755_v24 = vsel %vm170_vm11, 1.0, %v2169_v5  ;;  %v1065_v26 = vadd.f32 %v407_v0, %v359_v14  ;;  %v361_v27 = vmul.f32 %v313_v15, %v1036_v12  ;;  %v756_v36 = vsel %vm171_vm12, 1.0, %v2169_v5  ;;  %v80_v14 = vld [vmem:[%s2165_s1 + $0x80] sm:$0xff] }
  0x13   :  { %v314_v28 = vsub.f32 1.0, %v755_v24  ;;  %v410_v29 = vmul.f32 %v755_v24, %v74_v13  ;;  %503 = vst.msk [vmem:[%s2167_s3 + $0x30] sm:$0xff] %vm496_vm1, %v1053_v20  ;;  %v1079_v34 = vadd.f32 %v408_v10, %v360_v21  ;;  %vm172_vm13 = vcmp.ne.s32.totalorder %v124_v18, 0  ;;  %v1156_v13 = vld [vmem:[%s2164_s0 + $0x78] sm:$0xff] }
  0x14   :  { %vm173_vm14 = vcmp.ne.s32.totalorder %v125_v19, 0  ;;  %504 = vst.msk [vmem:[%s2167_s3 + $0x38] sm:$0xff] %vm496_vm1, %v1065_v26  ;;  %v1095_v39 = vadd.f32 %v409_v16, %v361_v27  ;;  %v315_v41 = vsub.f32 1.0, %v756_v36  ;;  %v411_v44 = vmul.f32 %v756_v36, %v75_v25  ;;  %v130_v19 = vld [vmem:[%s2166_s2 + $0x90] sm:$0xff]  ;;  %v131_v21 = vld [vmem:[%s2166_s2 + $0x98] sm:$0xff]  ;;  %v1179_v27 = vld [vmem:[%s2164_s0 + $0x80] sm:$0xff] }
  0x15   :  { %v362_v40 = vmul.f32 %v314_v28, %v1059_v22  ;;  %505 = vst.msk [vmem:[%s2167_s3 + $0x40] sm:$0xff] %vm496_vm1, %v1079_v34  ;;  %v757_v48 = vsel %vm172_vm13, 1.0, %v2169_v5  ;;  %v758_v49 = vsel %vm173_vm14, 1.0, %v2169_v5  ;;  %vm174_vm15 = vcmp.ne.s32.totalorder %v126_v30, 0 }
  0x16   :  { %vm175_vm0 = vcmp.ne.s32.totalorder %v127_v32, 0  ;;  %506 = vst.msk [vmem:[%s2167_s3 + $0x48] sm:$0xff] %vm496_vm1, %v1095_v39  ;;  %v363_v53 = vmul.f32 %v315_v41, %v1084_v35  ;;  %v316_v54 = vsub.f32 1.0, %v757_v48  ;;  %v412_v55 = vmul.f32 %v757_v48, %v76_v38  ;;  %v133_v41 = vld [vmem:[%s2166_s2 + $0xa8] sm:$0xff] }
  0x17   :  { %v1121_v51 = vadd.f32 %v410_v29, %v362_v40  ;;  %v317_v61 = vsub.f32 1.0, %v758_v49  ;;  %v413_v62 = vmul.f32 %v758_v49, %v77_v45  ;;  %v759_v0 = vsel %vm174_vm15, 1.0, %v2169_v5  ;;  %v81_v29 = vld [vmem:[%s2165_s1 + $0x88] sm:$0xff]  ;;  %v132_v40 = vld [vmem:[%s2166_s2 + $0xa0] sm:$0xff]  ;;  %v82_v49 = vld [vmem:[%s2165_s1 + $0x90] sm:$0xff] }
  0x18   :  { %v760_v2 = vsel %vm175_vm0, 1.0, %v2169_v5  ;;  %v1150_v6 = vadd.f32 %v411_v44, %v363_v53  ;;  %v364_v8 = vmul.f32 %v316_v54, %v1109_v46  ;;  %v318_v9 = vsub.f32 1.0, %v759_v0  ;;  %v1204_v45 = vld [vmem:[%s2164_s0 + $0x88] sm:$0xff] }
  0x19   :  { %507 = vst.msk [vmem:[%s2167_s3 + $0x50] sm:$0xff] %vm496_vm1, %v1121_v51  ;;  %v414_v10 = vmul.f32 %v759_v0, %v78_v50  ;;  %v365_v15 = vmul.f32 %v317_v61, %v1127_v57  ;;  %v319_v16 = vsub.f32 1.0, %v760_v2  ;;  %v415_v18 = vmul.f32 %v760_v2, %v79_v58  ;;  %v83_v58 = vld [vmem:[%s2165_s1 + $0x98] sm:$0xff]  ;;  %v84_v0 = vld [vmem:[%s2165_s1 + $0xa0] sm:$0xff] }
  0x1a   :  { %vm176_vm2 = vcmp.ne.s32.totalorder %v128_v59, 0  ;;  %508 = vst.msk [vmem:[%s2167_s3 + $0x58] sm:$0xff] %vm496_vm1, %v1150_v6  ;;  %v1173_v24 = vadd.f32 %v412_v55, %v364_v8  ;;  %v366_v25 = vmul.f32 %v318_v9, %v1138_v63  ;;  %vm177_vm3 = vcmp.ne.s32.totalorder %v129_v3, 0  ;;  %v1229_v59 = vld [vmem:[%s2164_s0 + $0x90] sm:$0xff] }
  0x1b   :  { %v761_v28 = vsel %vm176_vm2, 1.0, %v2169_v5  ;;  %v1185_v30 = vadd.f32 %v413_v62, %v365_v15  ;;  %v367_v32 = vmul.f32 %v319_v16, %v1156_v13  ;;  %v762_v48 = vsel %vm177_vm3, 1.0, %v2169_v5  ;;  %v134_v15 = vld [vmem:[%s2166_s2 + $0xb0] sm:$0xff] }
  0x1c   :  { %v320_v36 = vsub.f32 1.0, %v761_v28  ;;  %v416_v38 = vmul.f32 %v761_v28, %v80_v14  ;;  %509 = vst.msk [vmem:[%s2167_s3 + $0x60] sm:$0xff] %vm496_vm1, %v1173_v24  ;;  %v1199_v44 = vadd.f32 %v414_v10, %v366_v25  ;;  %vm178_vm4 = vcmp.ne.s32.totalorder %v130_v19, 0  ;;  %v1247_v10 = vld [vmem:[%s2164_s0 + $0x98] sm:$0xff]  ;;  %v85_v14 = vld [vmem:[%s2165_s1 + $0xa8] sm:$0xff]  ;;  %v1258_v19 = vld [vmem:[%s2164_s0 + $0xa0] sm:$0xff] }
  0x1d   :  { %vm179_vm5 = vcmp.ne.s32.totalorder %v131_v21, 0  ;;  %510 = vst.msk [vmem:[%s2167_s3 + $0x68] sm:$0xff] %vm496_vm1, %v1185_v30  ;;  %v1215_v50 = vadd.f32 %v415_v18, %v367_v32  ;;  %v321_v54 = vsub.f32 1.0, %v762_v48  ;;  %v417_v55 = vmul.f32 %v762_v48, %v81_v29  ;;  %2215 = vst [vmem:[#allocation2_spill] sm:$0xff] %v1247_v10  ;;  %v135_v28 = vld [vmem:[%s2166_s2 + $0xb8] sm:$0xff] }
  0x1e   :  { %v368_v53 = vmul.f32 %v320_v36, %v1179_v27  ;;  %511 = vst.msk [vmem:[%s2167_s3 + $0x70] sm:$0xff] %vm496_vm1, %v1199_v44  ;;  %v763_v61 = vsel %vm178_vm4, 1.0, %v2169_v5  ;;  %v764_v62 = vsel %vm179_vm5, 1.0, %v2169_v5  ;;  %vm180_vm6 = vcmp.ne.s32.totalorder %v132_v40, 0  ;;  %2216 = vst [vmem:[#allocation3_spill] sm:$0xff] %v1258_v19  ;;  %v1276_v40 = vld [vmem:[%s2164_s0 + $0xa8] sm:$0xff] }
  0x1f   :  { %vm181_vm7 = vcmp.ne.s32.totalorder %v133_v41, 0  ;;  %512 = vst.msk [vmem:[%s2167_s3 + $0x78] sm:$0xff] %vm496_vm1, %v1215_v50  ;;  %v369_v3 = vmul.f32 %v321_v54, %v1204_v45  ;;  %v322_v8 = vsub.f32 1.0, %v763_v61  ;;  %v418_v9 = vmul.f32 %v763_v61, %v82_v49  ;;  %2217 = vst [vmem:[#allocation4_spill] sm:$0xff] %v1276_v40  ;;  %v86_v41 = vld [vmem:[%s2165_s1 + $0xb0] sm:$0xff]  ;;  %v136_v54 = vld [vmem:[%s2166_s2 + $0xc0] sm:$0xff] }
  0x20   :  { %v1241_v2 = vadd.f32 %v416_v38, %v368_v53  ;;  %v323_v16 = vsub.f32 1.0, %v764_v62  ;;  %v419_v18 = vmul.f32 %v764_v62, %v83_v58  ;;  %v765_v21 = vsel %vm180_vm6, 1.0, %v2169_v5  ;;  %v1299_v62 = vld [vmem:[%s2164_s0 + $0xb0] sm:$0xff] }
  0x21   :  { %v766_v25 = vsel %vm181_vm7, 1.0, %v2169_v5  ;;  %v1270_v29 = vadd.f32 %v417_v55, %v369_v3  ;;  %v370_v32 = vmul.f32 %v322_v8, %v1229_v59  ;;  %v324_v36 = vsub.f32 1.0, %v765_v21  ;;  %v137_v55 = vld [vmem:[%s2166_s2 + $0xc8] sm:$0xff]  ;;  %2218 = vst [vmem:[#allocation5_spill] sm:$0xff] %v1299_v62  ;;  %v87_v3 = vld [vmem:[%s2165_s1 + $0xb8] sm:$0xff] }
  0x22   :  { %513 = vst.msk [vmem:[%s2167_s3 + $0x80] sm:$0xff] %vm496_vm1, %v1241_v2  ;;  %v420_v38 = vmul.f32 %v765_v21, %v84_v0  ;;  %v371_v48 = vmul.f32 %v323_v16, %v1247_v10  ;;  %v325_v49 = vsub.f32 1.0, %v766_v25  ;;  %v421_v53 = vmul.f32 %v766_v25, %v85_v14  ;;  %v138_v16 = vld [vmem:[%s2166_s2 + $0xd0] sm:$0xff]  ;;  %v139_v21 = vld [vmem:[%s2166_s2 + $0xd8] sm:$0xff] }
  0x23   :  { %vm182_vm8 = vcmp.ne.s32.totalorder %v134_v15, 0  ;;  %514 = vst.msk [vmem:[%s2167_s3 + $0x88] sm:$0xff] %vm496_vm1, %v1270_v29  ;;  %v1293_v58 = vadd.f32 %v418_v9, %v370_v32  ;;  %v372_v61 = vmul.f32 %v324_v36, %v1258_v19  ;;  %vm183_vm9 = vcmp.ne.s32.totalorder %v135_v28, 0  ;;  %v1324_v25 = vld [vmem:[%s2164_s0 + $0xb8] sm:$0xff]  ;;  %v88_v32 = vld [vmem:[%s2165_s1 + $0xc0] sm:$0xff] }
  0x24   :  { %v767_v0 = vsel %vm182_vm8, 1.0, %v2169_v5  ;;  %v1305_v8 = vadd.f32 %v419_v18, %v371_v48  ;;  %v373_v14 = vmul.f32 %v325_v49, %v1276_v40  ;;  %2221 = vst [vmem:[#allocation8_spill] sm:$0xff] %v1324_v25  ;;  %v768_v28 = vsel %vm183_vm9, 1.0, %v2169_v5  ;;  %v89_v49 = vld [vmem:[%s2165_s1 + $0xc8] sm:$0xff]  ;;  %v92_v19 = vld [vmem:[%s2165_s1 + $0xe0] sm:$0xff] }
  0x25   :  { %v326_v9 = vsub.f32 1.0, %v767_v0  ;;  %v422_v15 = vmul.f32 %v767_v0, %v86_v41  ;;  %515 = vst.msk [vmem:[%s2167_s3 + $0x90] sm:$0xff] %vm496_vm1, %v1293_v58  ;;  %v1319_v18 = vadd.f32 %v420_v38, %v372_v61  ;;  %vm184_vm10 = vcmp.ne.s32.totalorder %v136_v54, 0  ;;  %v1349_v54 = vld [vmem:[%s2164_s0 + $0xc0] sm:$0xff]  ;;  %v90_v61 = vld [vmem:[%s2165_s1 + $0xd0] sm:$0xff] }
  0x26   :  { %2219 = vst [vmem:[#allocation6_spill] sm:$0xff] %v1305_v8  ;;  %vm185_vm11 = vcmp.ne.s32.totalorder %v137_v55, 0  ;;  %516 = vst.msk [vmem:[%s2167_s3 + $0x98] sm:$0xff] %vm496_vm1, %v1305_v8  ;;  %v1335_v36 = vadd.f32 %v421_v53, %v373_v14  ;;  %v327_v41 = vsub.f32 1.0, %v768_v28  ;;  %v423_v48 = vmul.f32 %v768_v28, %v87_v3  ;;  %v1367_v28 = vld [vmem:[%s2164_s0 + $0xc8] sm:$0xff] }
  0x27   :  { %2220 = vst [vmem:[#allocation7_spill] sm:$0xff] %v1319_v18  ;;  %v374_v38 = vmul.f32 %v326_v9, %v1299_v62  ;;  %517 = vst.msk [vmem:[%s2167_s3 + $0xa0] sm:$0xff] %vm496_vm1, %v1319_v18  ;;  %v769_v53 = vsel %vm184_vm10, 1.0, %v2169_v5  ;;  %v770_v55 = vsel %vm185_vm11, 1.0, %v2169_v5  ;;  %vm186_vm12 = vcmp.ne.s32.totalorder %v138_v16, 0  ;;  %v91_v16 = vld [vmem:[%s2165_s1 + $0xd8] sm:$0xff] }
  0x28   :  { %2222 = vst [vmem:[#allocation9_spill] sm:$0xff] %v1335_v36  ;;  %2223 = vst [vmem:[#allocation10_spill] sm:$0xff] %v1349_v54  ;;  %vm187_vm13 = vcmp.ne.s32.totalorder %v139_v21, 0  ;;  %v375_v3 = vmul.f32 %v327_v41, %v1324_v25  ;;  %v328_v14 = vsub.f32 1.0, %v769_v53  ;;  %v424_v9 = vmul.f32 %v769_v53, %v88_v32  ;;  %v140_v21 = vld [vmem:[%s2166_s2 + $0xe0] sm:$0xff]  ;;  %v141_v25 = vld [vmem:[%s2166_s2 + $0xe8] sm:$0xff] }
  0x29   :  { %518 = vst.msk [vmem:[%s2167_s3 + $0xa8] sm:$0xff] %vm496_vm1, %v1335_v36  ;;  %v1361_v0 = vadd.f32 %v422_v15, %v374_v38  ;;  %2225 = vst [vmem:[#allocation12_spill] sm:$0xff] %v1367_v28  ;;  %v329_v5 = vsub.f32 1.0, %v770_v55  ;;  %v425_v15 = vmul.f32 %v770_v55, %v89_v49  ;;  %v1378_v38 = vld [vmem:[%s2164_s0 + $0xd0] sm:$0xff]  ;;  %v2227_v32 = vmov 0.0   ;;  %v1396_v36 = vld [vmem:[%s2164_s0 + $0xd8] sm:$0xff] }
  0x2a   :  { %2226 = vst [vmem:[#allocation13_spill] sm:$0xff] %v1378_v38  ;;  %v771_v41 = vsel %vm186_vm12, 1.0, %v2227_v32  ;;  %v772_v53 = vsel %vm187_vm13, 1.0, %v2227_v32  ;;  %v1390_v49 = vadd.f32 %v423_v48, %v375_v3  ;;  %v376_v55 = vmul.f32 %v328_v14, %v1349_v54  ;;  %2229 = vst [vmem:[#allocation15_spill] sm:$0xff] %v1396_v36  ;;  %v142_v48 = vld [vmem:[%s2166_s2 + $0xf0] sm:$0xff]  ;;  %v1419_v14 = vld [vmem:[%s2164_s0 + $0xe0] sm:$0xff] }
  0x2b   :  { %2224 = vst [vmem:[#allocation11_spill] sm:$0xff] %v1361_v0  ;;  %519 = vst.msk [vmem:[%s2167_s3 + $0xb0] sm:$0xff] %vm496_vm1, %v1361_v0  ;;  %v330_v62 = vsub.f32 1.0, %v771_v41  ;;  %v426_v40 = vmul.f32 %v771_v41, %v90_v61  ;;  %v377_v18 = vmul.f32 %v329_v5, %v1367_v28  ;;  %v331_v10 = vsub.f32 1.0, %v772_v53  ;;  %v143_v61 = vld [vmem:[%s2166_s2 + $0xf8] sm:$0xff]  ;;  %v98_v54 = vld [vmem:[%s2165_s1 + $0x110] sm:$0xff] }
  0x2c   :  { %2228 = vst [vmem:[#allocation14_spill] sm:$0xff] %v1390_v49  ;;  %v427_v8 = vmul.f32 %v772_v53, %v91_v16  ;;  %vm188_vm14 = vcmp.ne.s32.totalorder %v140_v21, 0  ;;  %520 = vst.msk [vmem:[%s2167_s3 + $0xb8] sm:$0xff] %vm496_vm1, %v1390_v49  ;;  %v1413_v3 = vadd.f32 %v424_v9, %v376_v55  ;;  %v93_v21 = vld [vmem:[%s2165_s1 + $0xe8] sm:$0xff]  ;;  %vm189_vm15 = vcmp.ne.s32.totalorder %v141_v25, 0  ;;  %v94_v25 = vld [vmem:[%s2165_s1 + $0xf0] sm:$0xff] }
  0x2d   :  { %v378_v5 = vmul.f32 %v330_v62, %v1378_v38  ;;  %2231 = vst [vmem:[#allocation17_spill] sm:$0xff] %v1419_v14  ;;  %v773_v16 = vsel %vm188_vm14, 1.0, %v2227_v32  ;;  %v1425_v41 = vadd.f32 %v425_v15, %v377_v18  ;;  %v379_v53 = vmul.f32 %v331_v10, %v1396_v36  ;;  %v144_v62 = vld [vmem:[%s2166_s2 + $0x100] sm:$0xff]  ;;  %v145_v38 = vld [vmem:[%s2166_s2 + $0x108] sm:$0xff]  ;;  %v95_v36 = vld [vmem:[%s2165_s1 + $0xf8] sm:$0xff] }
  0x2e   :  { %2230 = vst [vmem:[#allocation16_spill] sm:$0xff] %v1413_v3  ;;  %v332_v9 = vsub.f32 1.0, %v773_v16  ;;  %v428_v55 = vmul.f32 %v773_v16, %v92_v19  ;;  %521 = vst.msk [vmem:[%s2167_s3 + $0xc0] sm:$0xff] %vm496_vm1, %v1413_v3  ;;  %v1444_v10 = vld [vmem:[%s2164_s0 + $0xe8] sm:$0xff]  ;;  %v774_v19 = vsel %vm189_vm15, 1.0, %v2227_v32  ;;  %vm190_vm0 = vcmp.ne.s32.totalorder %v142_v48, 0 }
  0x2f   :  { %2232 = vst [vmem:[#allocation18_spill] sm:$0xff] %v1425_v41  ;;  %v1439_v18 = vadd.f32 %v426_v40, %v378_v5  ;;  %2234 = vst [vmem:[#allocation20_spill] sm:$0xff] %v1444_v10  ;;  %vm191_vm2 = vcmp.ne.s32.totalorder %v143_v61, 0  ;;  %v1455_v40 = vadd.f32 %v427_v8, %v379_v53  ;;  %v333_v5 = vsub.f32 1.0, %v774_v19  ;;  %v1469_v48 = vld [vmem:[%s2164_s0 + $0xf0] sm:$0xff] }
  0x30   :  { %522 = vst.msk [vmem:[%s2167_s3 + $0xc8] sm:$0xff] %vm496_vm1, %v1425_v41  ;;  %v380_v15 = vmul.f32 %v332_v9, %v1419_v14  ;;  %v429_v16 = vmul.f32 %v774_v19, %v93_v21  ;;  %2236 = vst [vmem:[#allocation22_spill] sm:$0xff] %v1469_v48  ;;  %v775_v8 = vsel %vm190_vm0, 1.0, %v2227_v32  ;;  %v776_v61 = vsel %vm191_vm2, 1.0, %v2227_v32  ;;  %v96_v21 = vld [vmem:[%s2165_s1 + $0x100] sm:$0xff]  ;;  %v1516_v41 = vld [vmem:[%s2164_s0 + $0x108] sm:$0xff] }
  0x31   :  { %2233 = vst [vmem:[#allocation19_spill] sm:$0xff] %v1439_v18  ;;  %2235 = vst [vmem:[#allocation21_spill] sm:$0xff] %v1455_v40  ;;  %vm192_vm3 = vcmp.ne.s32.totalorder %v144_v62, 0  ;;  %vm193_vm4 = vcmp.ne.s32.totalorder %v145_v38, 0  ;;  %v381_v9 = vmul.f32 %v333_v5, %v1444_v10  ;;  %v334_v19 = vsub.f32 1.0, %v775_v8  ;;  %v97_v38 = vld [vmem:[%s2165_s1 + $0x108] sm:$0xff] }
  0x32   :  { %523 = vst.msk [vmem:[%s2167_s3 + $0xd0] sm:$0xff] %vm496_vm1, %v1439_v18  ;;  %524 = vst.msk [vmem:[%s2167_s3 + $0xd8] sm:$0xff] %vm496_vm1, %v1455_v40  ;;  %v1481_v53 = vadd.f32 %v428_v55, %v380_v15  ;;  %v430_v14 = vmul.f32 %v775_v8, %v94_v25  ;;  %v1487_v18 = vld [vmem:[%s2164_s0 + $0xf8] sm:$0xff]  ;;  %v146_v62 = vld [vmem:[%s2166_s2 + $0x110] sm:$0xff]  ;;  %v335_v40 = vsub.f32 1.0, %v776_v61  ;;  %v431_v55 = vmul.f32 %v776_v61, %v95_v36 }
  0x33   :  { %2238 = vst [vmem:[#allocation24_spill] sm:$0xff] %v1487_v18  ;;  %v1498_v15 = vld [vmem:[%s2164_s0 + $0x100] sm:$0xff]  ;;  %v777_v25 = vsel %vm192_vm3, 1.0, %v2227_v32  ;;  %v778_v5 = vsel %vm193_vm4, 1.0, %v2227_v32  ;;  %v147_v8 = vld [vmem:[%s2166_s2 + $0x118] sm:$0xff]  ;;  %v1510_v36 = vadd.f32 %v429_v16, %v381_v9  ;;  %v382_v61 = vmul.f32 %v334_v19, %v1469_v48  ;;  %2241 = vst [vmem:[#allocation27_spill] sm:$0xff] %v1516_v41 }
  0x34   :  { %2237 = vst [vmem:[#allocation23_spill] sm:$0xff] %v1481_v53  ;;  %2239 = vst [vmem:[#allocation25_spill] sm:$0xff] %v1498_v15  ;;  %v336_v10 = vsub.f32 1.0, %v777_v25  ;;  %v432_v28 = vmul.f32 %v777_v25, %v96_v21  ;;  %v383_v3 = vmul.f32 %v335_v40, %v1487_v18  ;;  %v337_v49 = vsub.f32 1.0, %v778_v5  ;;  %v148_v16 = vld [vmem:[%s2166_s2 + $0x120] sm:$0xff]  ;;  %v149_v21 = vld [vmem:[%s2166_s2 + $0x128] sm:$0xff] }
  0x35   :  { %525 = vst.msk [vmem:[%s2167_s3 + $0xe0] sm:$0xff] %vm496_vm1, %v1481_v53  ;;  %2240 = vst [vmem:[#allocation26_spill] sm:$0xff] %v1510_v36  ;;  %v433_v0 = vmul.f32 %v778_v5, %v97_v38  ;;  %vm194_vm5 = vcmp.ne.s32.totalorder %v146_v62, 0  ;;  %v1533_v9 = vadd.f32 %v430_v14, %v382_v61  ;;  %v1539_v19 = vld [vmem:[%s2164_s0 + $0x110] sm:$0xff]  ;;  %v99_v62 = vld [vmem:[%s2165_s1 + $0x118] sm:$0xff]  ;;  %vm195_vm6 = vcmp.ne.s32.totalorder %v147_v8, 0 }
  0x36   :  { %526 = vst.msk [vmem:[%s2167_s3 + $0xe8] sm:$0xff] %vm496_vm1, %v1510_v36  ;;  %v384_v40 = vmul.f32 %v336_v10, %v1498_v15  ;;  %2243 = vst [vmem:[#allocation29_spill] sm:$0xff] %v1539_v19  ;;  %v779_v38 = vsel %vm194_vm5, 1.0, %v2227_v32  ;;  %v1545_v25 = vadd.f32 %v431_v55, %v383_v3  ;;  %v385_v5 = vmul.f32 %v337_v49, %v1516_v41  ;;  %v150_v10 = vld [vmem:[%s2166_s2 + $0x130] sm:$0xff]  ;;  %v151_v15 = vld [vmem:[%s2166_s2 + $0x138] sm:$0xff] }
  0x37   :  { %2242 = vst [vmem:[#allocation28_spill] sm:$0xff] %v1533_v9  ;;  %v338_v14 = vsub.f32 1.0, %v779_v38  ;;  %v434_v61 = vmul.f32 %v779_v38, %v98_v54  ;;  %527 = vst.msk [vmem:[%s2167_s3 + $0xf0] sm:$0xff] %vm496_vm1, %v1533_v9  ;;  %v1564_v54 = vld [vmem:[%s2164_s0 + $0x118] sm:$0xff]  ;;  %v780_v49 = vsel %vm195_vm6, 1.0, %v2227_v32  ;;  %v100_v55 = vld [vmem:[%s2165_s1 + $0x120] sm:$0xff]  ;;  %vm545_vm4 = vcmp.ne.f32.partialorder %v883_v4, %v930_v31 }
  0x38   :  { %2244 = vst [vmem:[#allocation30_spill] sm:$0xff] %v1545_v25  ;;  %v1559_v3 = vadd.f32 %v432_v28, %v384_v40  ;;  %2246 = vst [vmem:[#allocation32_spill] sm:$0xff] %v1564_v54  ;;  %vm196_vm7 = vcmp.ne.s32.totalorder %v148_v16, 0  ;;  %vm197_vm8 = vcmp.ne.s32.totalorder %v149_v21, 0  ;;  %v1575_v28 = vadd.f32 %v433_v0, %v385_v5  ;;  %v101_v41 = vld [vmem:[%s2165_s1 + $0x128] sm:$0xff]  ;;  %v1589_v16 = vld [vmem:[%s2164_s0 + $0x120] sm:$0xff] }
  0x39   :  { %528 = vst.msk [vmem:[%s2167_s3 + $0xf8] sm:$0xff] %vm496_vm1, %v1545_v25  ;;  %v386_v8 = vmul.f32 %v338_v14, %v1539_v19  ;;  %v339_v40 = vsub.f32 1.0, %v780_v49  ;;  %v435_v38 = vmul.f32 %v780_v49, %v99_v62  ;;  %2248 = vst [vmem:[#allocation34_spill] sm:$0xff] %v1589_v16  ;;  %v781_v0 = vsel %vm196_vm7, 1.0, %v2227_v32  ;;  %v102_v62 = vld [vmem:[%s2165_s1 + $0x130] sm:$0xff]  ;;  %v1636_v25 = vld [vmem:[%s2164_s0 + $0x138] sm:$0xff] }
  0x3a   :  { %2245 = vst [vmem:[#allocation31_spill] sm:$0xff] %v1559_v3  ;;  %2247 = vst [vmem:[#allocation33_spill] sm:$0xff] %v1575_v28  ;;  %v782_v21 = vsel %vm197_vm8, 1.0, %v2227_v32  ;;  %vm198_vm9 = vcmp.ne.s32.totalorder %v150_v10, 0  ;;  %vm199_vm10 = vcmp.ne.s32.totalorder %v151_v15, 0  ;;  %v340_v49 = vsub.f32 1.0, %v781_v0 }
  0x3b   :  { %529 = vst.msk [vmem:[%s2167_s3 + $0x100] sm:$0xff] %vm496_vm1, %v1559_v3  ;;  %530 = vst.msk [vmem:[%s2167_s3 + $0x108] sm:$0xff] %vm496_vm1, %v1575_v28  ;;  %v1601_v5 = vadd.f32 %v434_v61, %v386_v8  ;;  %v387_v14 = vmul.f32 %v339_v40, %v1564_v54  ;;  %v436_v19 = vmul.f32 %v781_v0, %v100_v55  ;;  %v1607_v3 = vld [vmem:[%s2164_s0 + $0x128] sm:$0xff]  ;;  %v103_v15 = vld [vmem:[%s2165_s1 + $0x138] sm:$0xff]  ;;  %v341_v28 = vsub.f32 1.0, %v782_v21 }
  0x3c   :  { %2250 = vst [vmem:[#allocation36_spill] sm:$0xff] %v1607_v3  ;;  %v152_v10 = vld [vmem:[%s2166_s2 + $0x140] sm:$0xff]  ;;  %v437_v61 = vmul.f32 %v782_v21, %v101_v41  ;;  %v1618_v8 = vld [vmem:[%s2164_s0 + $0x130] sm:$0xff]  ;;  %v783_v55 = vsel %vm198_vm9, 1.0, %v2227_v32  ;;  %v784_v40 = vsel %vm199_vm10, 1.0, %v2227_v32  ;;  %v153_v0 = vld [vmem:[%s2166_s2 + $0x148] sm:$0xff]  ;;  %v388_v21 = vmul.f32 %v340_v49, %v1589_v16 }
  0x3d   :  { %2249 = vst [vmem:[#allocation35_spill] sm:$0xff] %v1601_v5  ;;  %2251 = vst [vmem:[#allocation37_spill] sm:$0xff] %v1618_v8  ;;  %v1630_v41 = vadd.f32 %v435_v38, %v387_v14  ;;  %v342_v54 = vsub.f32 1.0, %v783_v55  ;;  %v438_v18 = vmul.f32 %v783_v55, %v102_v62  ;;  %v104_v48 = vld [vmem:[%s2165_s1 + $0x140] sm:$0xff]  ;;  %v389_v9 = vmul.f32 %v341_v28, %v1607_v3  ;;  %v154_v38 = vld [vmem:[%s2166_s2 + $0x150] sm:$0xff] }
  0x3e   :  { %531 = vst.msk [vmem:[%s2167_s3 + $0x110] sm:$0xff] %vm496_vm1, %v1601_v5  ;;  %2253 = vst [vmem:[#allocation39_spill] sm:$0xff] %v1636_v25  ;;  %v343_v36 = vsub.f32 1.0, %v784_v40  ;;  %v439_v53 = vmul.f32 %v784_v40, %v103_v15  ;;  %vm200_vm11 = vcmp.ne.s32.totalorder %v152_v10, 0  ;;  %v155_v62 = vld [vmem:[%s2166_s2 + $0x158] sm:$0xff]  ;;  %v1653_v14 = vadd.f32 %v436_v19, %v388_v21  ;;  %v1659_v49 = vld [vmem:[%s2164_s0 + $0x140] sm:$0xff] }
  0x3f   :  { %2252 = vst [vmem:[#allocation38_spill] sm:$0xff] %v1630_v41  ;;  %532 = vst.msk [vmem:[%s2167_s3 + $0x118] sm:$0xff] %vm496_vm1, %v1630_v41  ;;  %v390_v28 = vmul.f32 %v342_v54, %v1618_v8  ;;  %v785_v15 = vsel %vm200_vm11, 1.0, %v2227_v32  ;;  %v105_v10 = vld [vmem:[%s2165_s1 + $0x148] sm:$0xff]  ;;  %vm201_vm12 = vcmp.ne.s32.totalorder %v153_v0, 0  ;;  %v1665_v55 = vadd.f32 %v437_v61, %v389_v9  ;;  %v156_v54 = vld [vmem:[%s2166_s2 + $0x160] sm:$0xff] }
  0x40   :  { %2254 = vst [vmem:[#allocation40_spill] sm:$0xff] %v1653_v14  ;;  %2255 = vst [vmem:[#allocation41_spill] sm:$0xff] %v1659_v49  ;;  %v391_v40 = vmul.f32 %v343_v36, %v1636_v25  ;;  %v344_v19 = vsub.f32 1.0, %v785_v15  ;;  %v440_v21 = vmul.f32 %v785_v15, %v104_v48  ;;  %v157_v8 = vld [vmem:[%s2166_s2 + $0x168] sm:$0xff]  ;;  %v786_v36 = vsel %vm201_vm12, 1.0, %v2227_v32  ;;  %v106_v61 = vld [vmem:[%s2165_s1 + $0x150] sm:$0xff] }
  0x41   :  { %2256 = vst [vmem:[#allocation42_spill] sm:$0xff] %v1665_v55  ;;  %533 = vst.msk [vmem:[%s2167_s3 + $0x120] sm:$0xff] %vm496_vm1, %v1653_v14  ;;  %v1679_v9 = vadd.f32 %v438_v18, %v390_v28  ;;  %v1684_v48 = vld [vmem:[%s2164_s0 + $0x148] sm:$0xff]  ;;  %vm202_vm13 = vcmp.ne.s32.totalorder %v154_v38, 0  ;;  %vm203_vm14 = vcmp.ne.s32.totalorder %v155_v62, 0  ;;  %v345_v28 = vsub.f32 1.0, %v786_v36 }
  0x42   :  { %2258 = vst [vmem:[#allocation44_spill] sm:$0xff] %v1684_v48  ;;  %534 = vst.msk [vmem:[%s2167_s3 + $0x128] sm:$0xff] %vm496_vm1, %v1665_v55  ;;  %v1695_v18 = vadd.f32 %v439_v53, %v391_v40  ;;  %v392_v0 = vmul.f32 %v344_v19, %v1659_v49  ;;  %v441_v15 = vmul.f32 %v786_v36, %v105_v10  ;;  %v107_v25 = vld [vmem:[%s2165_s1 + $0x158] sm:$0xff]  ;;  %v1709_v38 = vld [vmem:[%s2164_s0 + $0x150] sm:$0xff]  ;;  %v787_v53 = vsel %vm202_vm13, 1.0, %v2227_v32 }
  0x43   :  { %2257 = vst [vmem:[#allocation43_spill] sm:$0xff] %v1679_v9  ;;  %535 = vst.msk [vmem:[%s2167_s3 + $0x130] sm:$0xff] %vm496_vm1, %v1679_v9  ;;  %v788_v62 = vsel %vm203_vm14, 1.0, %v2227_v32  ;;  %v108_v10 = vld [vmem:[%s2165_s1 + $0x160] sm:$0xff]  ;;  %vm204_vm15 = vcmp.ne.s32.totalorder %v156_v54, 0  ;;  %vm205_vm0 = vcmp.ne.s32.totalorder %v157_v8, 0  ;;  %v393_v19 = vmul.f32 %v345_v28, %v1684_v48 }
  0x44   :  { %2259 = vst [vmem:[#allocation45_spill] sm:$0xff] %v1695_v18  ;;  %536 = vst.msk [vmem:[%s2167_s3 + $0x138] sm:$0xff] %vm496_vm1, %v1695_v18  ;;  %v1721_v40 = vadd.f32 %v440_v21, %v392_v0  ;;  %v346_v36 = vsub.f32 1.0, %v787_v53  ;;  %v442_v49 = vmul.f32 %v787_v53, %v106_v61  ;;  %v1727_v9 = vld [vmem:[%s2164_s0 + $0x158] sm:$0xff]  ;;  %v109_v8 = vld [vmem:[%s2165_s1 + $0x168] sm:$0xff]  ;;  %v347_v18 = vsub.f32 1.0, %v788_v62 }
  0x45   :  { %v158_v54 = vld [vmem:[%s2166_s2 + $0x170] sm:$0xff]  ;;  %v443_v21 = vmul.f32 %v788_v62, %v107_v25  ;;  %v1738_v0 = vld [vmem:[%s2164_s0 + $0x160] sm:$0xff]  ;;  %v789_v61 = vsel %vm204_vm15, 1.0, %v2227_v32  ;;  %v790_v28 = vsel %vm205_vm0, 1.0, %v2227_v32  ;;  %v159_v53 = vld [vmem:[%s2166_s2 + $0x178] sm:$0xff]  ;;  %v1750_v25 = vadd.f32 %v441_v15, %v393_v19 }
  0x46   :  { %537 = vst.msk [vmem:[%s2167_s3 + $0x140] sm:$0xff] %vm496_vm1, %v1721_v40  ;;  %v394_v62 = vmul.f32 %v346_v36, %v1709_v38  ;;  %v348_v48 = vsub.f32 1.0, %v789_v61  ;;  %v444_v3 = vmul.f32 %v789_v61, %v108_v10  ;;  %v1756_v55 = vld [vmem:[%s2164_s0 + $0x168] sm:$0xff]  ;;  %v110_v16 = vld [vmem:[%s2165_s1 + $0x170] sm:$0xff]  ;;  %v395_v14 = vmul.f32 %v347_v18, %v1727_v9  ;;  %v111_v36 = vld [vmem:[%s2165_s1 + $0x178] sm:$0xff] }
  0x47   :  { %v349_v41 = vsub.f32 1.0, %v790_v28  ;;  %v445_v5 = vmul.f32 %v790_v28, %v109_v8  ;;  %vm206_vm2 = vcmp.ne.s32.totalorder %v158_v54, 0  ;;  %538 = vst.msk [vmem:[%s2167_s3 + $0x148] sm:$0xff] %vm496_vm1, %v1750_v25  ;;  %v1773_v19 = vld [vmem:[%s2164_s0 + $0x170] sm:$0xff]  ;;  %vm207_vm3 = vcmp.ne.s32.totalorder %v159_v53, 0  ;;  %v1792_v28 = vld [vmem:[%s2164_s0 + $0x178] sm:$0xff] }
  0x48   :  { %v1767_v15 = vadd.f32 %v442_v49, %v394_v62  ;;  %v396_v10 = vmul.f32 %v348_v48, %v1738_v0  ;;  %v791_v18 = vsel %vm206_vm2, 1.0, %v2227_v32  ;;  %v1779_v8 = vadd.f32 %v443_v21, %v395_v14  ;;  %v2272_v53 = vld [vmem:[#allocation18_spill] sm:$0xff]  ;;  %v2273_v62 = vld [vmem:[#allocation12_spill] sm:$0xff] }
  0x49   :  { %v397_v54 = vmul.f32 %v349_v41, %v1756_v55  ;;  %v350_v49 = vsub.f32 1.0, %v791_v18  ;;  %v446_v61 = vmul.f32 %v791_v18, %v110_v16  ;;  %v792_v14 = vsel %vm207_vm3, 1.0, %v2227_v32  ;;  %v2275_v18 = vld [vmem:[#allocation13_spill] sm:$0xff] }
  0x4a   :  { %539 = vst.msk [vmem:[%s2167_s3 + $0x150] sm:$0xff] %vm496_vm1, %v1767_v15  ;;  %v1787_v48 = vadd.f32 %v444_v3, %v396_v10  ;;  %vm546_vm5 = vcmp.ne.f32.partialorder %v895_v11, %v945_v37  ;;  %540 = vst.msk [vmem:[%s2167_s3 + $0x158] sm:$0xff] %vm496_vm1, %v1779_v8  ;;  %v351_v41 = vsub.f32 1.0, %v792_v14  ;;  %v447_v21 = vmul.f32 %v792_v14, %v111_v36  ;;  %v2274_v10 = vld [vmem:[#allocation19_spill] sm:$0xff] }
  0x4b   :  { %v1804_v3 = vadd.f32 %v445_v5, %v397_v54  ;;  %v398_v16 = vmul.f32 %v350_v49, %v1773_v19  ;;  %v793_v4 = vsel %vm545_vm4, 1.0, %v2227_v32  ;;  %v794_v11 = vsel %vm546_vm5, 1.0, %v2227_v32  ;;  %v2271_v5 = vld [vmem:[#allocation10_spill] sm:$0xff]  ;;  %v2277_v14 = vld [vmem:[#allocation15_spill] sm:$0xff] }
  0x4c   :  { %541 = vst.msk [vmem:[%s2167_s3 + $0x160] sm:$0xff] %vm496_vm1, %v1787_v48  ;;  %vm547_vm6 = vcmp.ne.f32.partialorder %v907_v17, %v956_v42  ;;  %vm548_vm7 = vcmp.ne.f32.partialorder %v917_v23, %v975_v47  ;;  %v399_v37 = vmul.f32 %v351_v41, %v1792_v28  ;;  %689 = vst.msk [vmem:[%s2168_s4] sm:$0xff] %vm496_vm1, %v793_v4  ;;  %v2278_v41 = vld [vmem:[#allocation23_spill] sm:$0xff]  ;;  %v2280_v4 = vld [vmem:[#allocation26_spill] sm:$0xff] }
  0x4d   :  { %542 = vst.msk [vmem:[%s2167_s3 + $0x168] sm:$0xff] %vm496_vm1, %v1804_v3  ;;  %v1823_v31 = vadd.f32 %v446_v61, %v398_v16  ;;  %690 = vst.msk [vmem:[%s2168_s4 + $0x8] sm:$0xff] %vm496_vm1, %v794_v11  ;;  %v795_v17 = vsel %vm547_vm6, 1.0, %v2227_v32  ;;  %v796_v23 = vsel %vm548_vm7, 1.0, %v2227_v32  ;;  %vm549_vm8 = vcmp.ne.f32.partialorder %v936_v33, %v1001_v56  ;;  %v2276_v61 = vld [vmem:[#allocation21_spill] sm:$0xff]  ;;  %v2281_v11 = vld [vmem:[#allocation20_spill] sm:$0xff] }
  0x4e   :  { %691 = vst.msk [vmem:[%s2168_s4 + $0x10] sm:$0xff] %vm496_vm1, %v795_v17  ;;  %692 = vst.msk [vmem:[%s2168_s4 + $0x18] sm:$0xff] %vm496_vm1, %v796_v23  ;;  %vm550_vm9 = vcmp.ne.f32.partialorder %v961_v43, %v1030_v7  ;;  %vm551_vm10 = vcmp.ne.f32.partialorder %v989_v52, %v1053_v20  ;;  %vm552_vm11 = vcmp.ne.f32.partialorder %v1007_v60, %v1065_v26  ;;  %v797_v47 = vsel %vm549_vm8, 1.0, %v2227_v32  ;;  %v2283_v17 = vld [vmem:[#allocation22_spill] sm:$0xff] }
  0x4f   :  { %543 = vst.msk [vmem:[%s2167_s3 + $0x170] sm:$0xff] %vm496_vm1, %v1823_v31  ;;  %v1857_v42 = vadd.f32 %v447_v21, %v399_v37  ;;  %v798_v33 = vsel %vm550_vm9, 1.0, %v2227_v32  ;;  %v799_v43 = vsel %vm551_vm10, 1.0, %v2227_v32  ;;  %693 = vst.msk [vmem:[%s2168_s4 + $0x20] sm:$0xff] %vm496_vm1, %v797_v47  ;;  %v800_v52 = vsel %vm552_vm11, 1.0, %v2227_v32  ;;  %v2279_v21 = vld [vmem:[#allocation17_spill] sm:$0xff] }
  0x50   :  { %694 = vst.msk [vmem:[%s2168_s4 + $0x28] sm:$0xff] %vm496_vm1, %v798_v33  ;;  %695 = vst.msk [vmem:[%s2168_s4 + $0x30] sm:$0xff] %vm496_vm1, %v799_v43  ;;  %vm553_vm12 = vcmp.ne.f32.partialorder %v1018_v1, %v1079_v34  ;;  %vm554_vm13 = vcmp.ne.f32.partialorder %v1036_v12, %v1095_v39  ;;  %vm555_vm14 = vcmp.ne.f32.partialorder %v1059_v22, %v1121_v51  ;;  %v2261_v51 = vld [vmem:[#allocation2_spill] sm:$0xff]  ;;  %v2282_v37 = vld [vmem:[#allocation28_spill] sm:$0xff] }
  0x51   :  { %544 = vst.msk [vmem:[%s2167_s3 + $0x178] sm:$0xff] %vm496_vm1, %v1857_v42  ;;  %696 = vst.msk [vmem:[%s2168_s4 + $0x38] sm:$0xff] %vm496_vm1, %v800_v52  ;;  %v801_v56 = vsel %vm553_vm12, 1.0, %v2227_v32  ;;  %v802_v60 = vsel %vm554_vm13, 1.0, %v2227_v32  ;;  %v803_v1 = vsel %vm555_vm14, 1.0, %v2227_v32  ;;  %vm556_vm15 = vcmp.ne.f32.partialorder %v1084_v35, %v1150_v6  ;;  %v2263_v6 = vld [vmem:[#allocation3_spill] sm:$0xff] }
  0x52   :  { %697 = vst.msk [vmem:[%s2168_s4 + $0x40] sm:$0xff] %vm496_vm1, %v801_v56  ;;  %698 = vst.msk [vmem:[%s2168_s4 + $0x48] sm:$0xff] %vm496_vm1, %v802_v60  ;;  %v804_v7 = vsel %vm556_vm15, 1.0, %v2227_v32  ;;  %vm557_vm0 = vcmp.ne.f32.partialorder %v1109_v46, %v1173_v24  ;;  %vm558_vm2 = vcmp.ne.f32.partialorder %v1127_v57, %v1185_v30  ;;  %vm559_vm3 = vcmp.ne.f32.partialorder %v1138_v63, %v1199_v44  ;;  %v2260_v46 = vld [vmem:[#allocation6_spill] sm:$0xff]  ;;  %v2262_v63 = vld [vmem:[#allocation7_spill] sm:$0xff] }
  0x53   :  { %699 = vst.msk [vmem:[%s2168_s4 + $0x50] sm:$0xff] %vm496_vm1, %v803_v1  ;;  %700 = vst.msk [vmem:[%s2168_s4 + $0x58] sm:$0xff] %vm496_vm1, %v804_v7  ;;  %v805_v12 = vsel %vm557_vm0, 1.0, %v2227_v32  ;;  %v806_v20 = vsel %vm558_vm2, 1.0, %v2227_v32  ;;  %v807_v22 = vsel %vm559_vm3, 1.0, %v2227_v32  ;;  %vm560_vm4 = vcmp.ne.f32.partialorder %v1156_v13, %v1215_v50  ;;  %v2264_v13 = vld [vmem:[#allocation9_spill] sm:$0xff] }
  0x54   :  { %701 = vst.msk [vmem:[%s2168_s4 + $0x60] sm:$0xff] %vm496_vm1, %v805_v12  ;;  %702 = vst.msk [vmem:[%s2168_s4 + $0x68] sm:$0xff] %vm496_vm1, %v806_v20  ;;  %v808_v26 = vsel %vm560_vm4, 1.0, %v2227_v32  ;;  %vm561_vm5 = vcmp.ne.f32.partialorder %v1179_v27, %v1241_v2  ;;  %vm562_vm6 = vcmp.ne.f32.partialorder %v1204_v45, %v1270_v29  ;;  %vm563_vm7 = vcmp.ne.f32.partialorder %v1229_v59, %v1293_v58  ;;  %v2265_v24 = vld [vmem:[#allocation4_spill] sm:$0xff]  ;;  %v2266_v27 = vld [vmem:[#allocation11_spill] sm:$0xff] }
  0x55   :  { %703 = vst.msk [vmem:[%s2168_s4 + $0x70] sm:$0xff] %vm496_vm1, %v807_v22  ;;  %704 = vst.msk [vmem:[%s2168_s4 + $0x78] sm:$0xff] %vm496_vm1, %v808_v26  ;;  %v809_v34 = vsel %vm561_vm5, 1.0, %v2227_v32  ;;  %v810_v35 = vsel %vm562_vm6, 1.0, %v2227_v32  ;;  %v811_v39 = vsel %vm563_vm7, 1.0, %v2227_v32  ;;  %vm564_vm8 = vcmp.ne.f32.partialorder %v2261_v51, %v2260_v46  ;;  %v2267_v30 = vld [vmem:[#allocation5_spill] sm:$0xff] }
  0x56   :  { %705 = vst.msk [vmem:[%s2168_s4 + $0x80] sm:$0xff] %vm496_vm1, %v809_v34  ;;  %706 = vst.msk [vmem:[%s2168_s4 + $0x88] sm:$0xff] %vm496_vm1, %v810_v35  ;;  %v812_v57 = vsel %vm564_vm8, 1.0, %v2227_v32  ;;  %vm565_vm9 = vcmp.ne.f32.partialorder %v2263_v6, %v2262_v63  ;;  %vm566_vm10 = vcmp.ne.f32.partialorder %v2265_v24, %v2264_v13  ;;  %vm567_vm11 = vcmp.ne.f32.partialorder %v2267_v30, %v2266_v27  ;;  %v2268_v59 = vld [vmem:[#allocation14_spill] sm:$0xff]  ;;  %v2269_v2 = vld [vmem:[#allocation8_spill] sm:$0xff] }
  0x57   :  { %707 = vst.msk [vmem:[%s2168_s4 + $0x90] sm:$0xff] %vm496_vm1, %v811_v39  ;;  %708 = vst.msk [vmem:[%s2168_s4 + $0x98] sm:$0xff] %vm496_vm1, %v812_v57  ;;  %v813_v44 = vsel %vm565_vm9, 1.0, %v2227_v32  ;;  %v814_v45 = vsel %vm566_vm10, 1.0, %v2227_v32  ;;  %v815_v50 = vsel %vm567_vm11, 1.0, %v2227_v32  ;;  %vm568_vm12 = vcmp.ne.f32.partialorder %v2269_v2, %v2268_v59  ;;  %v2270_v58 = vld [vmem:[#allocation16_spill] sm:$0xff] }
  0x58   :  { %709 = vst.msk [vmem:[%s2168_s4 + $0xa0] sm:$0xff] %vm496_vm1, %v813_v44  ;;  %710 = vst.msk [vmem:[%s2168_s4 + $0xa8] sm:$0xff] %vm496_vm1, %v814_v45  ;;  %v816_v29 = vsel %vm568_vm12, 1.0, %v2227_v32  ;;  %vm569_vm13 = vcmp.ne.f32.partialorder %v2271_v5, %v2270_v58  ;;  %vm570_vm14 = vcmp.ne.f32.partialorder %v2273_v62, %v2272_v53  ;;  %vm571_vm15 = vcmp.ne.f32.partialorder %v2275_v18, %v2274_v10  ;;  %v2284_v43 = vld [vmem:[#allocation30_spill] sm:$0xff]  ;;  %v2285_v52 = vld [vmem:[#allocation24_spill] sm:$0xff] }
  0x59   :  { %711 = vst.msk [vmem:[%s2168_s4 + $0xb0] sm:$0xff] %vm496_vm1, %v815_v50  ;;  %712 = vst.msk [vmem:[%s2168_s4 + $0xb8] sm:$0xff] %vm496_vm1, %v816_v29  ;;  %v817_v36 = vsel %vm569_vm13, 1.0, %v2227_v32  ;;  %v818_v54 = vsel %vm570_vm14, 1.0, %v2227_v32  ;;  %v819_v49 = vsel %vm571_vm15, 1.0, %v2227_v32  ;;  %vm572_vm0 = vcmp.ne.f32.partialorder %v2277_v14, %v2276_v61  ;;  %v2286_v60 = vld [vmem:[#allocation31_spill] sm:$0xff] }
  0x5a   :  { %713 = vst.msk [vmem:[%s2168_s4 + $0xc0] sm:$0xff] %vm496_vm1, %v817_v36  ;;  %714 = vst.msk [vmem:[%s2168_s4 + $0xc8] sm:$0xff] %vm496_vm1, %v818_v54  ;;  %v820_v16 = vsel %vm572_vm0, 1.0, %v2227_v32  ;;  %vm573_vm2 = vcmp.ne.f32.partialorder %v2279_v21, %v2278_v41  ;;  %vm574_vm3 = vcmp.ne.f32.partialorder %v2281_v11, %v2280_v4  ;;  %vm575_vm4 = vcmp.ne.f32.partialorder %v2283_v17, %v2282_v37  ;;  %v2287_v1 = vld [vmem:[#allocation25_spill] sm:$0xff]  ;;  %v2289_v12 = vld [vmem:[#allocation27_spill] sm:$0xff] }
  0x5b   :  { %715 = vst.msk [vmem:[%s2168_s4 + $0xd0] sm:$0xff] %vm496_vm1, %v819_v49  ;;  %716 = vst.msk [vmem:[%s2168_s4 + $0xd8] sm:$0xff] %vm496_vm1, %v820_v16  ;;  %v821_v23 = vsel %vm573_vm2, 1.0, %v2227_v32  ;;  %v822_v47 = vsel %vm574_vm3, 1.0, %v2227_v32  ;;  %v823_v33 = vsel %vm575_vm4, 1.0, %v2227_v32  ;;  %vm576_vm5 = vcmp.ne.f32.partialorder %v2285_v52, %v2284_v43  ;;  %v2288_v7 = vld [vmem:[#allocation33_spill] sm:$0xff] }
  0x5c   :  { %717 = vst.msk [vmem:[%s2168_s4 + $0xe0] sm:$0xff] %vm496_vm1, %v821_v23  ;;  %718 = vst.msk [vmem:[%s2168_s4 + $0xe8] sm:$0xff] %vm496_vm1, %v822_v47  ;;  %v824_v56 = vsel %vm576_vm5, 1.0, %v2227_v32  ;;  %vm577_vm6 = vcmp.ne.f32.partialorder %v2287_v1, %v2286_v60  ;;  %vm578_vm7 = vcmp.ne.f32.partialorder %v2289_v12, %v2288_v7  ;;  %v2290_v20 = vld [vmem:[#allocation35_spill] sm:$0xff]  ;;  %v2291_v22 = vld [vmem:[#allocation29_spill] sm:$0xff]  ;;  %vm587_vm0 = vcmp.ne.f32.partialorder %v1709_v38, %v1767_v15 }
  0x5d   :  { %719 = vst.msk [vmem:[%s2168_s4 + $0xf0] sm:$0xff] %vm496_vm1, %v823_v33  ;;  %vm579_vm8 = vcmp.ne.f32.partialorder %v2291_v22, %v2290_v20  ;;  %720 = vst.msk [vmem:[%s2168_s4 + $0xf8] sm:$0xff] %vm496_vm1, %v824_v56  ;;  %v825_v26 = vsel %vm577_vm6, 1.0, %v2227_v32  ;;  %v826_v34 = vsel %vm578_vm7, 1.0, %v2227_v32  ;;  %v2292_v39 = vld [vmem:[#allocation38_spill] sm:$0xff]  ;;  %v2293_v46 = vld [vmem:[#allocation32_spill] sm:$0xff]  ;;  %vm588_vm2 = vcmp.ne.f32.partialorder %v1727_v9, %v1779_v8 }
  0x5e   :  { %v827_v35 = vsel %vm579_vm8, 1.0, %v2227_v32  ;;  %vm580_vm9 = vcmp.ne.f32.partialorder %v2293_v46, %v2292_v39  ;;  %721 = vst.msk [vmem:[%s2168_s4 + $0x100] sm:$0xff] %vm496_vm1, %v825_v26  ;;  %722 = vst.msk [vmem:[%s2168_s4 + $0x108] sm:$0xff] %vm496_vm1, %v826_v34  ;;  %v2294_v57 = vld [vmem:[#allocation40_spill] sm:$0xff]  ;;  %v2295_v63 = vld [vmem:[#allocation34_spill] sm:$0xff]  ;;  %v835_v62 = vsel %vm587_vm0, 1.0, %v2227_v32  ;;  %vm589_vm3 = vcmp.ne.f32.partialorder %v1738_v0, %v1787_v48 }
  0x5f   :  { %723 = vst.msk [vmem:[%s2168_s4 + $0x110] sm:$0xff] %vm496_vm1, %v827_v35  ;;  %v828_v51 = vsel %vm580_vm9, 1.0, %v2227_v32  ;;  %vm581_vm10 = vcmp.ne.f32.partialorder %v2295_v63, %v2294_v57  ;;  %v2296_v6 = vld [vmem:[#allocation42_spill] sm:$0xff]  ;;  %v2297_v13 = vld [vmem:[#allocation36_spill] sm:$0xff]  ;;  %v2298_v24 = vld [vmem:[#allocation43_spill] sm:$0xff]  ;;  %v836_v38 = vsel %vm588_vm2, 1.0, %v2227_v32  ;;  %vm590_vm4 = vcmp.ne.f32.partialorder %v1756_v55, %v1804_v3 }
  0x60   :  { %vm582_vm11 = vcmp.ne.f32.partialorder %v2297_v13, %v2296_v6  ;;  %v2299_v27 = vld [vmem:[#allocation37_spill] sm:$0xff]  ;;  %724 = vst.msk [vmem:[%s2168_s4 + $0x118] sm:$0xff] %vm496_vm1, %v828_v51  ;;  %v829_v30 = vsel %vm581_vm10, 1.0, %v2227_v32  ;;  %v2301_v59 = vld [vmem:[#allocation39_spill] sm:$0xff]  ;;  %v2303_v58 = vld [vmem:[#allocation44_spill] sm:$0xff]  ;;  %vm591_vm5 = vcmp.ne.f32.partialorder %v1773_v19, %v1823_v31  ;;  %v837_v9 = vsel %vm589_vm3, 1.0, %v2227_v32 }
  0x61   :  { %vm583_vm12 = vcmp.ne.f32.partialorder %v2299_v27, %v2298_v24  ;;  %v830_v44 = vsel %vm582_vm11, 1.0, %v2227_v32  ;;  %v2300_v50 = vld [vmem:[#allocation45_spill] sm:$0xff]  ;;  %725 = vst.msk [vmem:[%s2168_s4 + $0x120] sm:$0xff] %vm496_vm1, %v829_v30  ;;  %vm586_vm15 = vcmp.ne.f32.partialorder %v2303_v58, %v1750_v25  ;;  %731 = vst.msk [vmem:[%s2168_s4 + $0x150] sm:$0xff] %vm496_vm1, %v835_v62  ;;  %v839_v25 = vsel %vm591_vm5, 1.0, %v2227_v32 }
  0x62   :  { %v831_v45 = vsel %vm583_vm12, 1.0, %v2227_v32  ;;  %vm584_vm13 = vcmp.ne.f32.partialorder %v2301_v59, %v2300_v50  ;;  %726 = vst.msk [vmem:[%s2168_s4 + $0x128] sm:$0xff] %vm496_vm1, %v830_v44  ;;  %v2302_v29 = vld [vmem:[#allocation41_spill] sm:$0xff]  ;;  %v834_v53 = vsel %vm586_vm15, 1.0, %v2227_v32  ;;  %732 = vst.msk [vmem:[%s2168_s4 + $0x158] sm:$0xff] %vm496_vm1, %v836_v38  ;;  %vm592_vm6 = vcmp.ne.f32.partialorder %v1792_v28, %v1857_v42 }
  0x63   :  { %727 = vst.msk [vmem:[%s2168_s4 + $0x130] sm:$0xff] %vm496_vm1, %v831_v45  ;;  %v832_v2 = vsel %vm584_vm13, 1.0, %v2227_v32  ;;  %vm585_vm14 = vcmp.ne.f32.partialorder %v2302_v29, %v1721_v40  ;;  %730 = vst.msk [vmem:[%s2168_s4 + $0x148] sm:$0xff] %vm496_vm1, %v834_v53  ;;  %v838_v40 = vsel %vm590_vm4, 1.0, %v2227_v32  ;;  %v840_v55 = vsel %vm592_vm6, 1.0, %v2227_v32 }
  0x64   :  { %728 = vst.msk [vmem:[%s2168_s4 + $0x138] sm:$0xff] %vm496_vm1, %v832_v2  ;;  %v833_v5 = vsel %vm585_vm14, 1.0, %v2227_v32  ;;  %733 = vst.msk [vmem:[%s2168_s4 + $0x160] sm:$0xff] %vm496_vm1, %v837_v9 }
  0x65   :  { %729 = vst.msk [vmem:[%s2168_s4 + $0x140] sm:$0xff] %vm496_vm1, %v833_v5  ;;  %734 = vst.msk [vmem:[%s2168_s4 + $0x168] sm:$0xff] %vm496_vm1, %v838_v40 }
  0x66   :  { %735 = vst.msk [vmem:[%s2168_s4 + $0x170] sm:$0xff] %vm496_vm1, %v839_v25  ;;  %736 = vst.msk [vmem:[%s2168_s4 + $0x178] sm:$0xff] %vm496_vm1, %v840_v55 }

</bundles_post_ra>
